<compile_context>
chip_gen: v7x
topology: tpu7x:2x2x1
jax: 0.10.0
libtpu: 0.0.40
codegen_flags: <defaults>
</compile_context>

<pallas_src>
import jax
import jax.numpy as jnp
from jax.experimental import pallas as pl
from jax.experimental.pallas import tpu as pltpu


SUBLANE = 8  # batch tile must be a multiple of this (or equal the full dim)


def _round_up(n, m):
    return pl.cdiv(n, m) * m


def fused_linear_kernel(x_ref, w_ref, b_ref, o_ref):
    # Single fused affine map: y = x @ W + b  (bf16 MXU inputs, f32 accumulate).
    y = jnp.dot(x_ref[...], w_ref[...], preferred_element_type=jnp.float32)
    o_ref[...] = (y + b_ref[...]).astype(o_ref.dtype)


def fuse_params(w1, b1, w2, b2):
    """Fold Linear(l1) -> Linear(l3) into one affine map. Exact in f32 math
    (no activation between the layers); done once, outside the forward pass."""
    w = jnp.dot(w1, w2, preferred_element_type=jnp.float32)        # [K, N]
    b = jnp.dot(b1, w2, preferred_element_type=jnp.float32) + b2   # [1, N]
    return w.astype(jnp.bfloat16), b.astype(jnp.float32)


def _batch_tiling(B, block_b):
    """Pick a batch tile tm (multiple of SUBLANE) and padded batch b_pad."""
    block_b = max(SUBLANE, _round_up(block_b, SUBLANE))
    b_min = _round_up(B, SUBLANE)
    tm = min(block_b, b_min)
    # v7x megacore: guarantee >= 2 grid steps whenever the batch is big enough.
    if b_min // tm < 2 and b_min >= 2 * SUBLANE:
        tm = _round_up(pl.cdiv(b_min, 2), SUBLANE)
    b_pad = _round_up(B, tm)
    return tm, b_pad


def net_forward(x, fused_w, fused_b, *, block_b=512):
    """x: [B, K] f32; fused_w: [K, N] bf16; fused_b: [1, N] f32 -> [B, N] f32."""
    B, K = x.shape
    N = fused_w.shape[1]
    tm, b_pad = _batch_tiling(B, block_b)

    xb = x.astype(jnp.bfloat16)
    if b_pad != B:  # pad batch rows only (feature dims stay unpadded)
        xb = jnp.zeros((b_pad, K), jnp.bfloat16).at[:B].set(xb)

    out = pl.pallas_call(
        fused_linear_kernel,
        out_shape=jax.ShapeDtypeStruct((b_pad, N), jnp.float32),
        grid_spec=pltpu.PrefetchScalarGridSpec(
            num_scalar_prefetch=0,
            grid=(b_pad // tm,),
            in_specs=[
                pl.BlockSpec((tm, K), lambda i: (i, 0)),   # x tile (full K)
                pl.BlockSpec((K, N), lambda i: (0, 0)),    # fused W (resident)
                pl.BlockSpec((1, N), lambda i: (0, 0)),    # fused b (resident)
            ],
            out_specs=pl.BlockSpec((tm, N), lambda i: (i, 0)),  # full-N block
        ),
        compiler_params=pltpu.CompilerParams(
            # Independent batch tiles -> shard across TensorCores (v7x).
            dimension_semantics=("parallel",),
            vmem_limit_bytes=32 * 1024 * 1024,
        ),
    )(xb, fused_w, fused_b)

    if b_pad != B:
        out = out[:B]
    return out


def init_params(key, input_size, hidden_size, output_size):
    """Deterministic init mimicking torch.nn.Linear (uniform +/- 1/sqrt(fan_in)).
    Weights are stored as [in, out] (transposed vs. PyTorch's [out, in])."""
    k1, k2, k3, k4 = jax.random.split(key, 4)
    lim1 = 1.0 / jnp.sqrt(jnp.float32(input_size))
    lim2 = 1.0 / jnp.sqrt(jnp.float32(hidden_size))
    w1 = jax.random.uniform(k1, (input_size, hidden_size), jnp.float32, -lim1, lim1)
    b1 = jax.random.uniform(k2, (1, hidden_size), jnp.float32, -lim1, lim1)
    w2 = jax.random.uniform(k3, (hidden_size, output_size), jnp.float32, -lim2, lim2)
    b2 = jax.random.uniform(k4, (1, output_size), jnp.float32, -lim2, lim2)
    return w1, b1, w2, b2


if __name__ == "__main__":
    # Small shapes implied by Net(input_size, hidden_size, output_size).
    batch, input_size, hidden_size, output_size = 8, 16, 32, 4

    key = jax.random.PRNGKey(0)
    kx, kp = jax.random.split(key)
    x = jax.random.normal(kx, (batch, input_size), jnp.float32)
    w1, b1, w2, b2 = init_params(kp, input_size, hidden_size, output_size)

    # Fuse + cast once (hoisted out of the forward pass).
    fused_w, fused_b = fuse_params(w1, b1, w2, b2)

    out = net_forward(x, fused_w, fused_b)
    out = jax.block_until_ready(out)
    assert out.shape == (batch, output_size)

    # Reference 1: identical bf16-MXU / f32-accumulate math in plain JAX (tight).
    ref_matched = (
        jnp.dot(x.astype(jnp.bfloat16), fused_w, preferred_element_type=jnp.float32)
        + fused_b
    )
    assert jnp.allclose(out, ref_matched, atol=1e-3, rtol=1e-3)

    # Reference 2: full-f32 PyTorch-equivalent forward (loose, bf16 rounding).
    ref_f32 = (x @ w1 + b1) @ w2 + b2
    assert jnp.allclose(out, ref_f32, atol=5e-2, rtol=5e-2)

    print("KERNEL_OK")
</pallas_src>

<mosaic_0001>
module attributes {stable_mosaic.version = 11 : i64} {
  func.func @fused_linear_kernel(%arg0: i32, %arg1: memref<8x16xbf16, #tpu.memory_space<vmem>>, %arg2: memref<16x4xbf16, #tpu.memory_space<vmem>>, %arg3: memref<1x4xf32, #tpu.memory_space<vmem>>, %arg4: memref<8x4xf32, #tpu.memory_space<vmem>>) attributes {dimension_semantics = [#tpu.dimension_semantics<parallel>], iteration_bounds = array<i64: 1>, scalar_prefetch = 0 : i64, scratch_operands = 0 : i64, tpu.core_type = #tpu.core_type<tc>, window_params = [{transform_indices = @transform_0, window_bounds = array<i64: 8, 16>}, {pipeline_mode = #tpu.pipeline_mode<synchronous>, transform_indices = @transform_1, window_bounds = array<i64: 16, 4>}, {pipeline_mode = #tpu.pipeline_mode<synchronous>, transform_indices = @transform_2, window_bounds = array<i64: 1, 4>}, {transform_indices = @transform_3, window_bounds = array<i64: 8, 4>}]} {
    %c0 = arith.constant 0 : index
    %c0_0 = arith.constant 0 : index
    %0 = vector.load %arg1[%c0, %c0_0] : memref<8x16xbf16, #tpu.memory_space<vmem>>, vector<8x16xbf16>
    %c0_1 = arith.constant 0 : index
    %c0_2 = arith.constant 0 : index
    %1 = vector.load %arg2[%c0_1, %c0_2] : memref<16x4xbf16, #tpu.memory_space<vmem>>, vector<16x4xbf16>
    %cst = arith.constant dense<0.000000e+00> : vector<8x4xf32>
    %2 = tpu.matmul %0, %1, %cst {dimension_numbers = #tpu.dot_dimension_numbers<[1], [0], [0], [1], [0, 0, 1, 1], [], []>} : vector<8x16xbf16>, vector<16x4xbf16>, vector<8x4xf32> -> vector<8x4xf32>
    %c0_3 = arith.constant 0 : index
    %c0_4 = arith.constant 0 : index
    %3 = vector.load %arg3[%c0_3, %c0_4] : memref<1x4xf32, #tpu.memory_space<vmem>>, vector<1x4xf32>
    %4 = vector.broadcast %3 : vector<1x4xf32> to vector<8x4xf32>
    %5 = arith.addf %2, %4 : vector<8x4xf32>
    %c0_5 = arith.constant 0 : index
    %c0_6 = arith.constant 0 : index
    %6 = vector.load %arg4[%c0_5, %c0_6] : memref<8x4xf32, #tpu.memory_space<vmem>>, vector<8x4xf32>
    tpu.vector_store %arg4[%c0_5, %c0_6], %5 {strides = array<i32>} : memref<8x4xf32, #tpu.memory_space<vmem>>, vector<8x4xf32>,
    return
  }
  func.func @transform_0(%arg0: i32) -> (i32, i32) {
    %c0_i32 = arith.constant 0 : i32
    %c0_i32_0 = arith.constant 0 : i32
    return %arg0, %c0_i32 : i32, i32
  }
  func.func @transform_1(%arg0: i32) -> (i32, i32) {
    %c0_i32 = arith.constant 0 : i32
    %c0_i32_0 = arith.constant 0 : i32
    %c0_i32_1 = arith.constant 0 : i32
    return %c0_i32, %c0_i32_0 : i32, i32
  }
  func.func @transform_2(%arg0: i32) -> (i32, i32) {
    %c0_i32 = arith.constant 0 : i32
    %c0_i32_0 = arith.constant 0 : i32
    %c0_i32_1 = arith.constant 0 : i32
    return %c0_i32, %c0_i32_0 : i32, i32
  }
  func.func @transform_3(%arg0: i32) -> (i32, i32) {
    %c0_i32 = arith.constant 0 : i32
    %c0_i32_0 = arith.constant 0 : i32
    return %arg0, %c0_i32 : i32, i32
  }
}

</mosaic_0001>

<bundles_post_ra>
// kernel: tpu_custom_call.1
= control target key start
LH: loop header
LB: loop body
LE: loop exit
PB: predicated region body
PF: predicated region fallthrough
CT: control target
= control target key end

     0   :  { %v95_v0 = vmov 0.0   ;;  %vm96_vm0 = vmmov 0   ;;  %vm31_vm1 = vcmask 130048   ;;  %vm75_vm2 = vcmask 31744   ;;  %s129_s1 = inlined_call_operand.vmem [shape: bf16[16,4], index: 1, kind: input, shape index: {}]   ;;  %s130_s0 = inlined_call_operand.vmem [shape: bf16[8,16], index: 0, kind: input, shape index: {}]   ;;  %s131_s2 = inlined_call_operand.vmem [shape: f32[1,4], index: 2, kind: input, shape index: {}]   ;;  %s132_s3 = inlined_call_operand.vmem [shape: f32[8,4], index: 3, kind: output, shape index: {}]  }
   0x1   :  { %86 = vmatprep.subr.bf16.mxu0 %v95_v0  ;;  %v94_v1 = vld [vmem:[%s129_s1] sm:$0xff]   ;;  %88 = vmatprep.mubr.msk.bf16.mxu0 %vm96_vm0, %v95_v0 }
   0x2   :  { %87 = vmatpush3.bf16.msra.mxu0 %v94_v1  ;;  %v15_v2 = vld [vmem:[%s130_s0] sm:$0xf] }
   0x3   :  { %v81_v3 = vld [vmem:[%s131_s2] ss:$0 sm:$0xff] }
   0x5   :  { %89 = vmatmul.mubr.msk.bf16.vlgmr.msra.gmra.mrb[0].mxu0 %vm31_vm1, %v15_v2 }
  0xd8   :  { %v69_v4 = vpop.f32.mrb[0].mxu0 }
  0xd9   :  { %v70_v5 = vadd.f32 %v81_v3, %v69_v4  ;;  %v90_v6 = vpop.f32.mrb[1].mxu0 }
  0xda   :  { %v72_v7 = vpop.f32.mrb[2].mxu0 }
  0xdb   :  { %76 = vst.msk [vmem:[%s132_s3] sm:$0xff] %vm75_vm2, %v70_v5  ;;  %v91_v8 = vpop.f32.mrb[3].mxu0 }

</bundles_post_ra>
